<compile_context>
chip_gen: v6e
topology: v6e:2x2x1
jax: 0.10.0
libtpu: 0.0.40
codegen_flags: <defaults>
</compile_context>

<pallas_src>
import jax
import jax.numpy as jnp
from jax.experimental import pallas as pl
from jax.experimental.pallas import tpu as pltpu

NEG_SLOPE = 0.2  # LeakyReLU negative slope


def _make_kernel(offsets):
    """Build the conv-block kernel for a fixed set of 3x3 tap offsets."""

    def kernel(x_ref, w_ref, scale_ref, shift_ref, o_ref):
        # x_ref:     (1, Cin, Lpad)     halo'd, lane-flattened input (bf16)
        # w_ref:     (9, Cout, Cin)     per-tap weight matrices (bf16)
        # scale_ref: (1, Cout, 1)       fused conv-bias+BN+FiLM scale (f32)
        # shift_ref: (1, Cout, 1)       fused conv-bias+BN+FiLM shift (f32)
        # o_ref:     (1, Cout, Lout)    output on the padded-width grid (f32)
        cout = o_ref.shape[1]
        lout = o_ref.shape[2]

        acc = jnp.zeros((cout, lout), jnp.float32)
        # Static unroll over the 9 taps: each is a shifted window of the
        # resident input slab -> (Cout, Cin) @ (Cin, Lout) on the MXU,
        # accumulated in fp32.  No im2col buffer ever touches HBM.
        for t, off in enumerate(offsets):
            xs = x_ref[0, :, off:off + lout]               # (Cin, Lout) bf16
            acc = acc + jnp.dot(w_ref[t], xs,
                                preferred_element_type=jnp.float32)

        y = acc * scale_ref[0] + shift_ref[0]              # bias + BN + FiLM
        y = jnp.where(y > 0, y, NEG_SLOPE * y)             # LeakyReLU(0.2)
        o_ref[0] = y.astype(o_ref.dtype)                   # lane-dense store

    return kernel


def u_net_conv_block_pallas(x_nchw, conv_w, conv_b,
                            bn_w, bn_b, bn_mean, bn_var, bn_eps,
                            gamma, beta):
    N, Cin, H, W = x_nchw.shape
    Cout, _, KH, KW = conv_w.shape
    assert KH == 3 and KW == 3, "kernel implements 3x3 / stride 1 / pad 1"

    Wp = W + 2                       # padded width
    Lout = H * Wp                    # output lanes on the padded-width grid
    Lp = (H + 2) * Wp                # flattened halo'd input length
    off_max = 2 * Wp + 2             # largest tap offset (kh=kw=2)
    # Lane-pad the flattened input so every shifted window stays in bounds
    # and the block is 128-lane aligned.
    Lpad = pl.cdiv(off_max + Lout, 128) * 128

    # --- glue: single halo pad + flatten (no 9x im2col expansion in HBM) ---
    xp = jnp.pad(x_nchw, ((0, 0), (0, 0), (1, 1), (1, 1)))   # (N,Cin,H+2,W+2)
    xflat = xp.reshape(N, Cin, Lp)
    xflat = jnp.pad(xflat, ((0, 0), (0, 0), (0, Lpad - Lp)))
    xflat = xflat.astype(jnp.bfloat16)                        # bf16 MXU operand

    # Per-tap weight matrices, tap order t = kh*3 + kw, matching `offsets`.
    w_taps = jnp.transpose(conv_w, (2, 3, 0, 1)).reshape(KH * KW, Cout, Cin)
    w_taps = w_taps.astype(jnp.bfloat16)

    # Fold conv bias + BN(eval) + FiLM into one per-(batch, channel) affine:
    #   ((y + b)*s + t)*g + be  ==  y*(s*g) + ((b*s + t)*g + be)
    gamma2 = gamma.reshape(N, Cout).astype(jnp.float32)
    beta2 = beta.reshape(N, Cout).astype(jnp.float32)
    bn_scale = (bn_w / jnp.sqrt(bn_var + bn_eps)).astype(jnp.float32)  # (Cout,)
    bn_shift = (bn_b - bn_mean * bn_scale).astype(jnp.float32)         # (Cout,)
    scale = (bn_scale[None, :] * gamma2).reshape(N, Cout, 1)
    shift = ((conv_b * bn_scale + bn_shift)[None, :] * gamma2 + beta2
             ).reshape(N, Cout, 1)

    offsets = tuple(kh * Wp + kw for kh in range(KH) for kw in range(KW))
    kernel = _make_kernel(offsets)

    out = pl.pallas_call(
        kernel,
        out_shape=jax.ShapeDtypeStruct((N, Cout, Lout), jnp.float32),
        grid_spec=pltpu.PrefetchScalarGridSpec(
            num_scalar_prefetch=0,
            grid=(N,),                                       # pipelined over batch
            in_specs=[
                pl.BlockSpec((1, Cin, Lpad), lambda b: (b, 0, 0)),      # input slab
                pl.BlockSpec((KH * KW, Cout, Cin), lambda b: (0, 0, 0)),  # weights
                pl.BlockSpec((1, Cout, 1), lambda b: (b, 0, 0)),        # fused scale
                pl.BlockSpec((1, Cout, 1), lambda b: (b, 0, 0)),        # fused shift
            ],
            out_specs=pl.BlockSpec((1, Cout, Lout), lambda b: (b, 0, 0)),
        ),
        compiler_params=pltpu.CompilerParams(
            dimension_semantics=("parallel",)),              # megacore on v7x
    )(xflat, w_taps, scale, shift)

    # Drop the 2 phantom columns per row and restore NCHW.
    out = out.reshape(N, Cout, H, Wp)[:, :, :, :W]
    return out


def _reference(x_nchw, conv_w, conv_b, bn_w, bn_b, bn_mean, bn_var, bn_eps,
               gamma, beta):
    y = jax.lax.conv_general_dilated(
        x_nchw, conv_w, window_strides=(1, 1), padding="SAME",
        dimension_numbers=("NCHW", "OIHW", "NCHW"))
    y = y + conv_b[None, :, None, None]
    scale = bn_w / jnp.sqrt(bn_var + bn_eps)
    shift = bn_b - bn_mean * scale
    y = y * scale[None, :, None, None] + shift[None, :, None, None]
    y = y * gamma[:, :, None, None] + beta[:, :, None, None]
    return jnp.where(y > 0, y, NEG_SLOPE * y)


if __name__ == "__main__":
    key = jax.random.PRNGKey(0)
    ks = jax.random.split(key, 9)

    N, Cin, H, W = 2, 4, 16, 16
    Cout, KH, KW = 8, 3, 3
    bn_eps = 1e-5

    x = jax.random.normal(ks[0], (N, Cin, H, W), dtype=jnp.float32)
    conv_w = 0.1 * jax.random.normal(ks[1], (Cout, Cin, KH, KW), dtype=jnp.float32)
    conv_b = 0.1 * jax.random.normal(ks[2], (Cout,), dtype=jnp.float32)
    bn_w = 1.0 + 0.1 * jax.random.normal(ks[3], (Cout,), dtype=jnp.float32)
    bn_b = 0.1 * jax.random.normal(ks[4], (Cout,), dtype=jnp.float32)
    bn_mean = 0.1 * jax.random.normal(ks[5], (Cout,), dtype=jnp.float32)
    bn_var = jnp.abs(jax.random.normal(ks[6], (Cout,), dtype=jnp.float32)) + 0.5
    gamma = 1.0 + 0.1 * jax.random.normal(ks[7], (N, Cout), dtype=jnp.float32)
    beta = 0.1 * jax.random.normal(ks[8], (N, Cout), dtype=jnp.float32)

    out = u_net_conv_block_pallas(x, conv_w, conv_b, bn_w, bn_b, bn_mean,
                                  bn_var, bn_eps, gamma, beta)
    out = jax.block_until_ready(out)

    ref = _reference(x, conv_w, conv_b, bn_w, bn_b, bn_mean, bn_var, bn_eps,
                     gamma, beta)
    assert out.shape == (N, Cout, H, W)
    # bf16 matmul operands with fp32 accumulation -> relaxed tolerance.
    assert jnp.allclose(out, ref, atol=5e-2, rtol=5e-2), "mismatch vs reference"

    print("KERNEL_OK")
</pallas_src>

<mosaic_0001>
module attributes {stable_mosaic.version = 11 : i64} {
  func.func @kernel(%arg0: i32, %arg1: memref<1x4x384xbf16, #tpu.memory_space<vmem>>, %arg2: memref<9x8x4xbf16, #tpu.memory_space<vmem>>, %arg3: memref<1x8x1xf32, #tpu.memory_space<vmem>>, %arg4: memref<1x8x1xf32, #tpu.memory_space<vmem>>, %arg5: memref<1x8x288xf32, #tpu.memory_space<vmem>>) attributes {dimension_semantics = [#tpu.dimension_semantics<parallel>], iteration_bounds = array<i64: 2>, scalar_prefetch = 0 : i64, scratch_operands = 0 : i64, tpu.core_type = #tpu.core_type<tc>, window_params = [{transform_indices = @transform_0, window_bounds = array<i64: 1, 4, 384>}, {pipeline_mode = #tpu.pipeline_mode<synchronous>, transform_indices = @transform_1, window_bounds = array<i64: 9, 8, 4>}, {transform_indices = @transform_2, window_bounds = array<i64: 1, 8, 1>}, {transform_indices = @transform_3, window_bounds = array<i64: 1, 8, 1>}, {transform_indices = @transform_4, window_bounds = array<i64: 1, 8, 288>}]} {
    %cst = arith.constant 0.000000e+00 : f32
    %0 = vector.broadcast %cst : f32 to vector<8x288xf32>
    %c0 = arith.constant 0 : index
    %c0_0 = arith.constant 0 : index
    %c0_1 = arith.constant 0 : index
    %1 = vector.load %arg1[%c0, %c0_0, %c0_1] : memref<1x4x384xbf16, #tpu.memory_space<vmem>>, vector<1x4x288xbf16>
    %2 = vector.shape_cast %1 : vector<1x4x288xbf16> to vector<4x288xbf16>
    %c0_2 = arith.constant 0 : index
    %c0_3 = arith.constant 0 : index
    %c0_4 = arith.constant 0 : index
    %3 = vector.load %arg2[%c0_2, %c0_3, %c0_4] : memref<9x8x4xbf16, #tpu.memory_space<vmem>>, vector<1x8x4xbf16>
    %4 = vector.shape_cast %3 : vector<1x8x4xbf16> to vector<8x4xbf16>
    %cst_5 = arith.constant dense<0.000000e+00> : vector<8x288xf32>
    %5 = tpu.matmul %4, %2, %cst_5 {dimension_numbers = #tpu.dot_dimension_numbers<[1], [0], [0], [1], [0, 0, 1, 1], [], []>} : vector<8x4xbf16>, vector<4x288xbf16>, vector<8x288xf32> -> vector<8x288xf32>
    %6 = arith.addf %0, %5 : vector<8x288xf32>
    %c0_6 = arith.constant 0 : index
    %c0_7 = arith.constant 0 : index
    %c1 = arith.constant 1 : index
    %7 = vector.load %arg1[%c0_6, %c0_7, %c1] : memref<1x4x384xbf16, #tpu.memory_space<vmem>>, vector<1x4x288xbf16>
    %8 = vector.shape_cast %7 : vector<1x4x288xbf16> to vector<4x288xbf16>
    %c1_8 = arith.constant 1 : index
    %c0_9 = arith.constant 0 : index
    %c0_10 = arith.constant 0 : index
    %9 = vector.load %arg2[%c1_8, %c0_9, %c0_10] : memref<9x8x4xbf16, #tpu.memory_space<vmem>>, vector<1x8x4xbf16>
    %10 = vector.shape_cast %9 : vector<1x8x4xbf16> to vector<8x4xbf16>
    %cst_11 = arith.constant dense<0.000000e+00> : vector<8x288xf32>
    %11 = tpu.matmul %10, %8, %cst_11 {dimension_numbers = #tpu.dot_dimension_numbers<[1], [0], [0], [1], [0, 0, 1, 1], [], []>} : vector<8x4xbf16>, vector<4x288xbf16>, vector<8x288xf32> -> vector<8x288xf32>
    %12 = arith.addf %6, %11 : vector<8x288xf32>
    %c0_12 = arith.constant 0 : index
    %c0_13 = arith.constant 0 : index
    %c2 = arith.constant 2 : index
    %13 = vector.load %arg1[%c0_12, %c0_13, %c2] : memref<1x4x384xbf16, #tpu.memory_space<vmem>>, vector<1x4x288xbf16>
    %14 = vector.shape_cast %13 : vector<1x4x288xbf16> to vector<4x288xbf16>
    %c2_14 = arith.constant 2 : index
    %c0_15 = arith.constant 0 : index
    %c0_16 = arith.constant 0 : index
    %15 = vector.load %arg2[%c2_14, %c0_15, %c0_16] : memref<9x8x4xbf16, #tpu.memory_space<vmem>>, vector<1x8x4xbf16>
    %16 = vector.shape_cast %15 : vector<1x8x4xbf16> to vector<8x4xbf16>
    %cst_17 = arith.constant dense<0.000000e+00> : vector<8x288xf32>
    %17 = tpu.matmul %16, %14, %cst_17 {dimension_numbers = #tpu.dot_dimension_numbers<[1], [0], [0], [1], [0, 0, 1, 1], [], []>} : vector<8x4xbf16>, vector<4x288xbf16>, vector<8x288xf32> -> vector<8x288xf32>
    %18 = arith.addf %12, %17 : vector<8x288xf32>
    %c0_18 = arith.constant 0 : index
    %c0_19 = arith.constant 0 : index
    %c18 = arith.constant 18 : index
    %19 = vector.load %arg1[%c0_18, %c0_19, %c18] : memref<1x4x384xbf16, #tpu.memory_space<vmem>>, vector<1x4x288xbf16>
    %20 = vector.shape_cast %19 : vector<1x4x288xbf16> to vector<4x288xbf16>
    %c3 = arith.constant 3 : index
    %c0_20 = arith.constant 0 : index
    %c0_21 = arith.constant 0 : index
    %21 = vector.load %arg2[%c3, %c0_20, %c0_21] : memref<9x8x4xbf16, #tpu.memory_space<vmem>>, vector<1x8x4xbf16>
    %22 = vector.shape_cast %21 : vector<1x8x4xbf16> to vector<8x4xbf16>
    %cst_22 = arith.constant dense<0.000000e+00> : vector<8x288xf32>
    %23 = tpu.matmul %22, %20, %cst_22 {dimension_numbers = #tpu.dot_dimension_numbers<[1], [0], [0], [1], [0, 0, 1, 1], [], []>} : vector<8x4xbf16>, vector<4x288xbf16>, vector<8x288xf32> -> vector<8x288xf32>
    %24 = arith.addf %18, %23 : vector<8x288xf32>
    %c0_23 = arith.constant 0 : index
    %c0_24 = arith.constant 0 : index
    %c19 = arith.constant 19 : index
    %25 = vector.load %arg1[%c0_23, %c0_24, %c19] : memref<1x4x384xbf16, #tpu.memory_space<vmem>>, vector<1x4x288xbf16>
    %26 = vector.shape_cast %25 : vector<1x4x288xbf16> to vector<4x288xbf16>
    %c4 = arith.constant 4 : index
    %c0_25 = arith.constant 0 : index
    %c0_26 = arith.constant 0 : index
    %27 = vector.load %arg2[%c4, %c0_25, %c0_26] : memref<9x8x4xbf16, #tpu.memory_space<vmem>>, vector<1x8x4xbf16>
    %28 = vector.shape_cast %27 : vector<1x8x4xbf16> to vector<8x4xbf16>
    %cst_27 = arith.constant dense<0.000000e+00> : vector<8x288xf32>
    %29 = tpu.matmul %28, %26, %cst_27 {dimension_numbers = #tpu.dot_dimension_numbers<[1], [0], [0], [1], [0, 0, 1, 1], [], []>} : vector<8x4xbf16>, vector<4x288xbf16>, vector<8x288xf32> -> vector<8x288xf32>
    %30 = arith.addf %24, %29 : vector<8x288xf32>
    %c0_28 = arith.constant 0 : index
    %c0_29 = arith.constant 0 : index
    %c20 = arith.constant 20 : index
    %31 = vector.load %arg1[%c0_28, %c0_29, %c20] : memref<1x4x384xbf16, #tpu.memory_space<vmem>>, vector<1x4x288xbf16>
    %32 = vector.shape_cast %31 : vector<1x4x288xbf16> to vector<4x288xbf16>
    %c5 = arith.constant 5 : index
    %c0_30 = arith.constant 0 : index
    %c0_31 = arith.constant 0 : index
    %33 = vector.load %arg2[%c5, %c0_30, %c0_31] : memref<9x8x4xbf16, #tpu.memory_space<vmem>>, vector<1x8x4xbf16>
    %34 = vector.shape_cast %33 : vector<1x8x4xbf16> to vector<8x4xbf16>
    %cst_32 = arith.constant dense<0.000000e+00> : vector<8x288xf32>
    %35 = tpu.matmul %34, %32, %cst_32 {dimension_numbers = #tpu.dot_dimension_numbers<[1], [0], [0], [1], [0, 0, 1, 1], [], []>} : vector<8x4xbf16>, vector<4x288xbf16>, vector<8x288xf32> -> vector<8x288xf32>
    %36 = arith.addf %30, %35 : vector<8x288xf32>
    %c0_33 = arith.constant 0 : index
    %c0_34 = arith.constant 0 : index
    %c36 = arith.constant 36 : index
    %37 = vector.load %arg1[%c0_33, %c0_34, %c36] : memref<1x4x384xbf16, #tpu.memory_space<vmem>>, vector<1x4x288xbf16>
    %38 = vector.shape_cast %37 : vector<1x4x288xbf16> to vector<4x288xbf16>
    %c6 = arith.constant 6 : index
    %c0_35 = arith.constant 0 : index
    %c0_36 = arith.constant 0 : index
    %39 = vector.load %arg2[%c6, %c0_35, %c0_36] : memref<9x8x4xbf16, #tpu.memory_space<vmem>>, vector<1x8x4xbf16>
    %40 = vector.shape_cast %39 : vector<1x8x4xbf16> to vector<8x4xbf16>
    %cst_37 = arith.constant dense<0.000000e+00> : vector<8x288xf32>
    %41 = tpu.matmul %40, %38, %cst_37 {dimension_numbers = #tpu.dot_dimension_numbers<[1], [0], [0], [1], [0, 0, 1, 1], [], []>} : vector<8x4xbf16>, vector<4x288xbf16>, vector<8x288xf32> -> vector<8x288xf32>
    %42 = arith.addf %36, %41 : vector<8x288xf32>
    %c0_38 = arith.constant 0 : index
    %c0_39 = arith.constant 0 : index
    %c37 = arith.constant 37 : index
    %43 = vector.load %arg1[%c0_38, %c0_39, %c37] : memref<1x4x384xbf16, #tpu.memory_space<vmem>>, vector<1x4x288xbf16>
    %44 = vector.shape_cast %43 : vector<1x4x288xbf16> to vector<4x288xbf16>
    %c7 = arith.constant 7 : index
    %c0_40 = arith.constant 0 : index
    %c0_41 = arith.constant 0 : index
    %45 = vector.load %arg2[%c7, %c0_40, %c0_41] : memref<9x8x4xbf16, #tpu.memory_space<vmem>>, vector<1x8x4xbf16>
    %46 = vector.shape_cast %45 : vector<1x8x4xbf16> to vector<8x4xbf16>
    %cst_42 = arith.constant dense<0.000000e+00> : vector<8x288xf32>
    %47 = tpu.matmul %46, %44, %cst_42 {dimension_numbers = #tpu.dot_dimension_numbers<[1], [0], [0], [1], [0, 0, 1, 1], [], []>} : vector<8x4xbf16>, vector<4x288xbf16>, vector<8x288xf32> -> vector<8x288xf32>
    %48 = arith.addf %42, %47 : vector<8x288xf32>
    %c0_43 = arith.constant 0 : index
    %c0_44 = arith.constant 0 : index
    %c38 = arith.constant 38 : index
    %49 = vector.load %arg1[%c0_43, %c0_44, %c38] : memref<1x4x384xbf16, #tpu.memory_space<vmem>>, vector<1x4x288xbf16>
    %50 = vector.shape_cast %49 : vector<1x4x288xbf16> to vector<4x288xbf16>
    %c8 = arith.constant 8 : index
    %c0_45 = arith.constant 0 : index
    %c0_46 = arith.constant 0 : index
    %51 = vector.load %arg2[%c8, %c0_45, %c0_46] : memref<9x8x4xbf16, #tpu.memory_space<vmem>>, vector<1x8x4xbf16>
    %52 = vector.shape_cast %51 : vector<1x8x4xbf16> to vector<8x4xbf16>
    %cst_47 = arith.constant dense<0.000000e+00> : vector<8x288xf32>
    %53 = tpu.matmul %52, %50, %cst_47 {dimension_numbers = #tpu.dot_dimension_numbers<[1], [0], [0], [1], [0, 0, 1, 1], [], []>} : vector<8x4xbf16>, vector<4x288xbf16>, vector<8x288xf32> -> vector<8x288xf32>
    %54 = arith.addf %48, %53 : vector<8x288xf32>
    %c0_48 = arith.constant 0 : index
    %c0_49 = arith.constant 0 : index
    %c0_50 = arith.constant 0 : index
    %55 = vector.load %arg3[%c0_48, %c0_49, %c0_50] : memref<1x8x1xf32, #tpu.memory_space<vmem>>, vector<1x8x1xf32>
    %56 = vector.shape_cast %55 : vector<1x8x1xf32> to vector<8x1xf32>
    %57 = vector.broadcast %56 : vector<8x1xf32> to vector<8x288xf32>
    %58 = arith.mulf %54, %57 : vector<8x288xf32>
    %c0_51 = arith.constant 0 : index
    %c0_52 = arith.constant 0 : index
    %c0_53 = arith.constant 0 : index
    %59 = vector.load %arg4[%c0_51, %c0_52, %c0_53] : memref<1x8x1xf32, #tpu.memory_space<vmem>>, vector<1x8x1xf32>
    %60 = vector.shape_cast %59 : vector<1x8x1xf32> to vector<8x1xf32>
    %61 = vector.broadcast %60 : vector<8x1xf32> to vector<8x288xf32>
    %62 = arith.addf %58, %61 : vector<8x288xf32>
    %cst_54 = arith.constant 0.000000e+00 : f32
    %63 = vector.broadcast %cst_54 : f32 to vector<8x288xf32>
    %64 = arith.cmpf ogt, %62, %63 : vector<8x288xf32>
    %cst_55 = arith.constant 2.000000e-01 : f32
    %65 = vector.broadcast %cst_55 : f32 to vector<8x288xf32>
    %66 = arith.mulf %65, %62 : vector<8x288xf32>
    %67 = arith.select %64, %62, %66 : vector<8x288xi1>, vector<8x288xf32>
    %c0_56 = arith.constant 0 : index
    %c0_57 = arith.constant 0 : index
    %c0_58 = arith.constant 0 : index
    %68 = vector.load %arg5[%c0_56, %c0_57, %c0_58] : memref<1x8x288xf32, #tpu.memory_space<vmem>>, vector<1x8x288xf32>
    %69 = vector.shape_cast %68 : vector<1x8x288xf32> to vector<8x288xf32>
    %70 = vector.shape_cast %67 : vector<8x288xf32> to vector<1x8x288xf32>
    tpu.vector_store %arg5[%c0_56, %c0_57, %c0_58], %70 {strides = array<i32>} : memref<1x8x288xf32, #tpu.memory_space<vmem>>, vector<1x8x288xf32>,
    return
  }
  func.func @transform_0(%arg0: i32) -> (i32, i32, i32) {
    %c0_i32 = arith.constant 0 : i32
    %c0_i32_0 = arith.constant 0 : i32
    %c0_i32_1 = arith.constant 0 : i32
    return %arg0, %c0_i32, %c0_i32_0 : i32, i32, i32
  }
  func.func @transform_1(%arg0: i32) -> (i32, i32, i32) {
    %c0_i32 = arith.constant 0 : i32
    %c0_i32_0 = arith.constant 0 : i32
    %c0_i32_1 = arith.constant 0 : i32
    %c0_i32_2 = arith.constant 0 : i32
    return %c0_i32, %c0_i32_0, %c0_i32_1 : i32, i32, i32
  }
  func.func @transform_2(%arg0: i32) -> (i32, i32, i32) {
    %c0_i32 = arith.constant 0 : i32
    %c0_i32_0 = arith.constant 0 : i32
    %c0_i32_1 = arith.constant 0 : i32
    return %arg0, %c0_i32, %c0_i32_0 : i32, i32, i32
  }
  func.func @transform_3(%arg0: i32) -> (i32, i32, i32) {
    %c0_i32 = arith.constant 0 : i32
    %c0_i32_0 = arith.constant 0 : i32
    %c0_i32_1 = arith.constant 0 : i32
    return %arg0, %c0_i32, %c0_i32_0 : i32, i32, i32
  }
  func.func @transform_4(%arg0: i32) -> (i32, i32, i32) {
    %c0_i32 = arith.constant 0 : i32
    %c0_i32_0 = arith.constant 0 : i32
    %c0_i32_1 = arith.constant 0 : i32
    return %arg0, %c0_i32, %c0_i32_0 : i32, i32, i32
  }
}

</mosaic_0001>

<bundles_post_ra>
// kernel: tpu_custom_call.1
= control target key start
LH: loop header
LB: loop body
LE: loop exit
PB: predicated region body
PF: predicated region fallthrough
CT: control target
= control target key end

     0   :  { %9 = vsyncpa [#allocation3], 0  ;;  %s1995_s0 = inlined_call_operand.vmem [shape: bf16[2,4,384], index: 0, kind: input, shape index: {}]   ;;  %s1996_s1 = inlined_call_operand.vmem [shape: bf16[9,8,4], index: 1, kind: input, shape index: {}]   ;;  %s1997_s2 = inlined_call_operand.vmem [shape: f32[2,8,1], index: 2, kind: input, shape index: {}]   ;;  %s1998_s3 = inlined_call_operand.vmem [shape: f32[2,8,1], index: 3, kind: input, shape index: {}]   ;;  %s1999_s4 = inlined_call_operand.hbm [shape: f32[2,8,288], index: 4, kind: output, shape index: {}]  }
   0x1   :  { %11 = vsyncpa [#allocation3 + $0x1], 0  ;;  %s1734_s15 = smov 0   ;;  %s1736_s16 = smov 0  }
   0x2   :  { %s1738_s17 = smov 0   ;;  %s1740_s18 = smov 0  }
   0x3 LB: > { %s1755_s19 = sadd.s32 4294967295, %s1694_s18   ;;  %s1453_s20 = sadd.s32 4294967294, %s1694_s18   ;;  %s1694_s18 = sphi %s1740_s18, %s2005_s18   ;;  %s1690_s17 = sphi %s1738_s17, %s2004_s17   ;;  %s1686_s16 = sphi %s1736_s16, %s2003_s16   ;;  %s1682_s15 = sphi %s1734_s15, %s2002_s15  }
   0x4   : > { %s1759_s21 = sadd.s32 1, %s1694_s18   ;;  %s123_s22 = sadd.s32 1, %s1690_s17 }
   0x5   : > { %s120_s23 = ssub.s32 %s1694_s18, %s1759_s21  ;;  %p133_p0 = scmp.ne.s32.totalorder %s1690_s17, %s1686_s16 }
   0x6   : > { %p121_p1 = scmp.eq.s32.totalorder %s120_s23, 0  ;;  %p134_p2 = scmp.eq.s32.totalorder %s1755_s19, 1 }
   0x7   : > { %p139_p3 = scmp.ne.s32.totalorder %s1686_s16, %s1682_s15  ;;  %p140_p4 = scmp.eq.s32.totalorder %s1453_s20, 1 }
   0x8   : > { %s1770_s24 = scalar_select %p121_p1, %s1690_s17, %s123_s22  }
   0x9   : > { %p1772_p5 = por %p134_p2, %p133_p0  ;;  %p1776_p6 = por %p140_p4, %p139_p3 }
   0xa   : > { %p1456_p7 = scmp.ge.s32.totalorder %s1694_s18, 1  ;;  %p183_p8 = scmp.lt.s32.totalorder %s1694_s18, 3 }
   0xc   : > { %p184_p9 = pnand %p1456_p7, %p183_p8 }
   0xd   : > { %p217_p10 = scmp.lt.s32.totalorder (!%p184_p9), %s1755_s19, 1  ;;  %s1700_s6 = smov (!%p184_p9), 127  }
   0xe   : > { %187 = sbr.rel (%p184_p9) target bundleno = 433 (0x1b1), region = 36  ;;  %s1701_s7 = smov (!%p184_p9), 126  }
   0xf   : > { %s1702_s8 = smov (!%p184_p9), 110   ;;  %s1703_s9 = smov (!%p184_p9), 109  }
  0x10   : > { %s1704_s10 = smov (!%p184_p9), 108   ;;  %s1705_s11 = smov (!%p184_p9), 92  }
  0x11   : > { %s1706_s12 = smov (!%p184_p9), 91   ;;  %s1707_s13 = smov (!%p184_p9), 90  }
  0x13   : > { %v240_v0 = vlaneseq  ;;  %v1696_v1 = vmov 1983009808   ;;  %v1697_v3 = vmov 0.0   ;;  %s1785_s27 = scalar_select %p217_p10, %s1755_s19, 1  ;;  %vm1698_vm0 = vmmov 0  }
  0x14   : > { %v238_v2 = vunpack.c.l.s4 %v1696_v1  ;;  %1516 = vmatprep.subr.bf16.mxu1 %v1697_v3  ;;  %1518 = vmatprep.mubr.msk.bf16.mxu1 %vm1698_vm0, %v1697_v3  ;;  %v1699_v6 = vmov 0   ;;  %vm265_vm1 = vcmask 1041408   ;;  %vm258_vm2 = vcmask 1039360   ;;  %v1460_v54 = vld [vmem:[%s1996_s1 + $0x4] sm:$0xf] }
  0x15   : > { %v241_v4 = vshrl.u32 %v240_v0, 7  ;;  %s1571_s28 = smul.u32 6, %s1785_s27  ;;  %307 = vmatprep.mubr.bf16.mxu0 %v1699_v6  ;;  %1624 = vset.pattern.permute.xlu0 %v1699_v6  ;;  %s1458_s14 = sshll.u32 %s1785_s27, 3  ;;  %vm261_vm3 = vcmask 31744   ;;  %vm475_vm4 = vcmask 1031168   ;;  %vm600_vm5 = vcmask 900096  }
  0x16   : > { %v239_v5 = vunpack.c.0.s8 %v238_v2  ;;  %1625 = vset.pattern.permute.xlu1 %v1699_v6  ;;  %s225_s23 = scalar_lea.vmem %s1997_s2, %s1458_s14  ;;  %s229_s30 = scalar_lea.vmem %s1998_s3, %s1458_s14  ;;  %v232_v0 = vld [vmem:[%s1996_s1] sm:$0xf]  ;;  %vm725_vm6 = vcmask 891904   ;;  %vm850_vm7 = vcmask 883712   ;;  %vm975_vm8 = vcmask 752640  }
  0x17   : > { %s1798_s5 = scalar_lea.vmem %s1995_s0, %s1571_s28  ;;  %v1324_v48 = vld [vmem:[%s225_s23] sm:$0xff]  ;;  %vm1100_vm9 = vcmask 744448   ;;  %vm1225_vm10 = vcmask 736256   ;;  %vm1353_vm12 = vcmask 261120   ;;  %s1708_s14 = smov [#allocation2]  }
  0x18   : > { %v1792_v7 = vsub.s32 %v239_v5, %v241_v4  ;;  %v231_v8 = vld [vmem:[%s1798_s5] sm:$0x3f]  ;;  %s1638_s20 = sshll.u32 %s1708_s14, 4  ;;  %s1639_s20 = int_to_ptr.vmem [resolvable:$false] %s1638_s20 }
  0x19   : > { %v236_v10 = vcombine.high %v231_v8, %v231_v8  ;;  %v449_v11 = vld [vmem:[%s1798_s5] sm:$0x3f]  ;;  %s1640_s22 = scalar_lea.vmem %s1639_s20, 768 }
  0x1a   : > { %v1802_v9 = vrot.slane %v231_v8, %v1792_v7  ;;  %v460_v14 = vrot.slane %v449_v11, %v1792_v7  ;;  %v453_v15 = vcombine.high %v449_v11, %v449_v11  ;;  %v574_v17 = vld [vmem:[%s1798_s5] sm:$0x3f]  ;;  %v1467_v11 = vld [vmem:[%s1996_s1 + $0x8] sm:$0xf] }
  0x1b   : > { %v1807_v12 = vrot.slane %v236_v10, %v1792_v7  ;;  %v585_v19 = vrot.slane %v574_v17, %v1792_v7  ;;  %v578_v20 = vcombine.high %v574_v17, %v574_v17  ;;  %v699_v22 = vld [vmem:[%s1798_s5] sm:$0x3f] }
  0x1c   : > { %252 = vrot.lane.b32.xlu0 %v1802_v9, %s1700_s6  ;;  %v1811_v13 = vcombine.high %v1802_v9, %v1802_v9  ;;  %v468_v16 = vcombine.high %v460_v14, %v460_v14  ;;  %v467_v18 = vrot.slane %v453_v15, %v1792_v7  ;;  %v710_v24 = vrot.slane %v699_v22, %v1792_v7  ;;  %v824_v27 = vld [vmem:[%s1798_s5] sm:$0x3f] }
  0x1d   : > { %256 = vrot.lane.b32.xlu1 %v1807_v12, %s1700_s6  ;;  %v593_v21 = vcombine.high %v585_v19, %v585_v19  ;;  %v592_v23 = vrot.slane %v578_v20, %v1792_v7  ;;  %v703_v25 = vcombine.high %v699_v22, %v699_v22  ;;  %v835_v29 = vrot.slane %v824_v27, %v1792_v7  ;;  %v949_v32 = vld [vmem:[%s1798_s5] sm:$0x3f]  ;;  %v1471_v20 = vld [vmem:[%s1996_s1 + $0xc] sm:$0xf] }
  0x1e   : > { %v718_v26 = vcombine.high %v710_v24, %v710_v24  ;;  %v828_v30 = vcombine.high %v824_v27, %v824_v27  ;;  %v960_v34 = vrot.slane %v949_v32, %v1792_v7  ;;  %v953_v35 = vcombine.high %v949_v32, %v949_v32  ;;  %v1074_v37 = vld [vmem:[%s1798_s5] sm:$0x3f] }
  0x1f   : > { %v717_v28 = vrot.slane %v703_v25, %v1792_v7  ;;  %v843_v31 = vcombine.high %v835_v29, %v835_v29  ;;  %v1085_v39 = vrot.slane %v1074_v37, %v1792_v7  ;;  %v1078_v40 = vcombine.high %v1074_v37, %v1074_v37  ;;  %v1199_v42 = vld [vmem:[%s1798_s5] sm:$0x3f]  ;;  %s214_s5 = sand.u32 1, %s1686_s16  }
  0x20   : > { %254 = vrot.lane.b32.xlu0 %v1811_v13, %s1700_s6  ;;  %v842_v33 = vrot.slane %v828_v30, %v1792_v7  ;;  %v968_v36 = vcombine.high %v960_v34, %v960_v34  ;;  %v967_v38 = vrot.slane %v953_v35, %v1792_v7  ;;  %v1210_v44 = vrot.slane %v1199_v42, %v1792_v7  ;;  %v1333_v49 = vld [vmem:[%s229_s30] sm:$0xff]  ;;  %s1570_s6 = smul.u32 24, %s214_s5 }
  0x21   : > { %469 = vrot.lane.b32.xlu1 %v460_v14, %s1701_s7  ;;  %v1093_v41 = vcombine.high %v1085_v39, %v1085_v39  ;;  %v1092_v43 = vrot.slane %v1078_v40, %v1792_v7  ;;  %v1203_v45 = vcombine.high %v1199_v42, %v1199_v42  ;;  %v366_v57 = vsel %vm265_vm1, %v1807_v12, 0 }
  0x22   : > { %v1218_v46 = vcombine.high %v1210_v44, %v1210_v44  ;;  %v360_v60 = vsel %vm265_vm1, %v1802_v9, 0 }
  0x23   : > { %v1217_v47 = vrot.slane %v1203_v45, %v1792_v7 }
  0x24   : > { %471 = vrot.lane.b32.xlu0 %v468_v16, %s1701_s7 }
  0x25   : > { %473 = vrot.lane.b32.xlu1 %v467_v18, %s1701_s7  ;;  %s1572_s7 = smul.u32 384, %s1755_s19  ;;  %s1356_s19 = scalar_lea.sflag [#allocation3], %s214_s5 }
  0x28   : > { %594 = vrot.lane.b32.xlu0 %v585_v19, %s1702_s8 }
  0x29   : > { %596 = vrot.lane.b32.xlu1 %v593_v21, %s1702_s8 }
  0x2c   : > { %598 = vrot.lane.b32.xlu0 %v592_v23, %s1702_s8  ;;  %s216_s8 = scalar_lea.vmem [#allocation2], %s1570_s6 }
  0x2d   : > { %719 = vrot.lane.b32.xlu1 %v710_v24, %s1703_s9 }
  0x30   : > { %721 = vrot.lane.b32.xlu0 %v718_v26, %s1703_s9 }
  0x31   : > { %723 = vrot.lane.b32.xlu1 %v717_v28, %s1703_s9  ;;  %v1475_v28 = vld [vmem:[%s1996_s1 + $0x10] sm:$0xf]  ;;  %s1370_s9 = sshll.u32 %s216_s8, 4  ;;  %s1371_s9 = int_to_ptr.vmem [resolvable:$true] %s1370_s9 }
  0x32   : > { %p1641_p0 = scmp.lt.s32.totalorder %s1371_s9, %s1639_s20 }
  0x34   : > { %844 = vrot.lane.b32.xlu0 %v835_v29, %s1704_s10 }
  0x35   : > { %846 = vrot.lane.b32.xlu1 %v843_v31, %s1704_s10 }
  0x38   : > { %848 = vrot.lane.b32.xlu0 %v842_v33, %s1704_s10 }
  0x39   : > { %969 = vrot.lane.b32.xlu1 %v960_v34, %s1705_s11 }
  0x3c   : > { %971 = vrot.lane.b32.xlu0 %v968_v36, %s1705_s11  ;;  %v1479_v36 = vld [vmem:[%s1996_s1 + $0x14] sm:$0xf] }
  0x3d   : > { %973 = vrot.lane.b32.xlu1 %v967_v38, %s1705_s11 }
  0x40   : > { %1094 = vrot.lane.b32.xlu0 %v1085_v39, %s1706_s12 }
  0x41   : > { %1096 = vrot.lane.b32.xlu1 %v1093_v41, %s1706_s12 }
  0x44   : > { %1098 = vrot.lane.b32.xlu0 %v1092_v43, %s1706_s12  ;;  %v1483_v43 = vld [vmem:[%s1996_s1 + $0x18] sm:$0xf]  ;;  %s1958_s12 = scalar_lea.hbm %s1999_s4, %s1572_s7 }
  0x45   : > { %1219 = vrot.lane.b32.xlu1 %v1210_v44, %s1707_s13 }
  0x48   : > { %1221 = vrot.lane.b32.xlu0 %v1218_v46, %s1707_s13 }
  0x49   : > { %1223 = vrot.lane.b32.xlu1 %v1217_v47, %s1707_s13  ;;  %s1634_s13 = scalar_lea.vmem %s1371_s9, 384 }
  0x4a   : > { %p1635_p11 = scmp.ne.s32.totalorder %s1371_s9, %s1634_s13  ;;  %p1642_p1 = scmp.lt.s32.totalorder %s1640_s22, %s1634_s13 }
  0x4c   : > { %1327 = vperm.xlu0 %1624, %v1324_v48   ;;  %p1636_p12 = pnand %p1635_p11, %p1772_p5  ;;  %p1643_p2 = por %p1642_p1, %p1641_p0 }
  0x4d   : > { %1336 = vperm.xlu1 %1625, %v1333_v49  }
  0x4e   : > { %p1637_p13 = pneg %p1636_p12 }
  0x50   : > { %p1644_p3 = pnand %p1643_p2, %p1637_p13 }
  0x8e   : > { %v253_v50 = vpop.permute.xlu0 %252 }
  0x8f   : > { %v257_v51 = vpop.permute.xlu1 %256 }
  0x90   : > { %v273_v52 = vsel %vm265_vm1, %v257_v51, 0 }
  0x91   : > { %1517 = vmatpush3.bf16.msra.mxu1 %v273_v52 }
  0x92   : > { %v255_v53 = vpop.permute.xlu0 %254  ;;  %1522 = vmatprep.subr.bf16.mxu1 %v1697_v3 }
  0x93   : > { %v260_v55 = vsel %vm258_vm2, %v255_v53, %v257_v51  ;;  %v259_v56 = vsel %vm258_vm2, %v253_v50, %v255_v53  ;;  %v470_v59 = vpop.permute.xlu1 %469  ;;  %v1487_v50 = vld [vmem:[%s1996_s1 + $0x1c] sm:$0xf] }
  0x94   : > { %1461 = vmatprep.subr.msk.bf16.mxu0 %vm265_vm1, %v260_v55  ;;  %v267_v58 = vsel %vm265_vm1, %v259_v56, 0  ;;  %1519 = vmatmul.mubr.msk.bf16.vlgmr.msra.gmra.mxu1 %vm261_vm3, %v1460_v54 }
  0x95   : > { %290 = vmatpush1.bf16.msra.mxu0 %v267_v58  ;;  %1523 = vmatpush3.bf16.msra.mxu1 %v366_v57 }
  0x96   : > { %1464 = vmatprep.subr.msk.bf16.mxu0 %vm265_vm1, %v1811_v13  ;;  %v472_v61 = vpop.permute.xlu0 %471  ;;  %1524 = vmatprep.mubr.msk.bf16.mxu1 %vm1698_vm0, %v1697_v3 }
  0x97   : > { %1528 = vmatprep.subr.bf16.mxu1 %v1697_v3  ;;  %v474_v62 = vpop.permute.xlu1 %473  ;;  %v476_v2 = vsel %vm475_vm4, %v470_v59, %v472_v61 }
  0x98   : > { %1462 = vmatmul.mubr.msk.bf16.vlgmr.msra.gmra.mxu0 %vm261_vm3, %v1460_v54  ;;  %v477_v63 = vsel %vm475_vm4, %v472_v61, %v474_v62  ;;  %v488_v4 = vsel %vm265_vm1, %v474_v62, 0  ;;  %v482_v7 = vsel %vm265_vm1, %v476_v2, 0  ;;  %v1491_v54 = vld [vmem:[%s1996_s1 + $0x20] sm:$0xf] }
  0x99   : > { %383 = vmatpush1.bf16.msra.mxu0 %v360_v60  ;;  %400 = vmatprep.mubr.bf16.mxu0 %v1699_v6 }
  0x9a   : > { %1468 = vmatprep.subr.msk.bf16.mxu0 %vm265_vm1, %v477_v63  ;;  %v595_v1 = vpop.permute.xlu0 %594 }
  0x9b   : > { %v597_v5 = vpop.permute.xlu1 %596 }
  0x9c   : > { %1525 = vmatmul.mubr.msk.bf16.vlgmr.msra.gmra.mxu1 %vm261_vm3, %v232_v0  ;;  %v601_v13 = vsel %vm600_vm5, %v595_v1, %v597_v5 }
  0x9d   : > { %1529 = vmatpush3.bf16.msra.mxu1 %v488_v4  ;;  %1530 = vmatprep.mubr.msk.bf16.mxu1 %vm1698_vm0, %v1697_v3  ;;  %v607_v16 = vsel %vm265_vm1, %v601_v13, 0 }
  0x9e   : > { %v599_v8 = vpop.permute.xlu0 %598  ;;  %1534 = vmatprep.subr.bf16.mxu1 %v1697_v3 }
  0x9f   : > { %v602_v9 = vsel %vm600_vm5, %v597_v5, %v599_v8  ;;  %v720_v10 = vpop.permute.xlu1 %719  ;;  %v613_v14 = vsel %vm265_vm1, %v599_v8, 0 }
  0xa0   : > { %1465 = vmatmul.mubr.msk.bf16.vlgmr.msra.gmra.mxu0 %vm261_vm3, %v232_v0 }
  0xa1   : > { %505 = vmatpush1.bf16.msra.mxu0 %v482_v7  ;;  %522 = vmatprep.mubr.bf16.mxu0 %v1699_v6 }
  0xa2   : > { %1472 = vmatprep.subr.msk.bf16.mxu0 %vm265_vm1, %v602_v9  ;;  %v722_v12 = vpop.permute.xlu0 %721 }
  0xa3   : > { %v724_v15 = vpop.permute.xlu1 %723  ;;  %v726_v21 = vsel %vm725_vm6, %v720_v10, %v722_v12 }
  0xa4   : > { %1531 = vmatmul.mubr.msk.bf16.vlgmr.msra.gmra.mxu1 %vm261_vm3, %v1467_v11  ;;  %v727_v18 = vsel %vm725_vm6, %v722_v12, %v724_v15  ;;  %v738_v22 = vsel %vm265_vm1, %v724_v15, 0  ;;  %v732_v24 = vsel %vm265_vm1, %v726_v21, 0 }
  0xa5   : > { %1535 = vmatpush3.bf16.msra.mxu1 %v613_v14  ;;  %1536 = vmatprep.mubr.msk.bf16.mxu1 %vm1698_vm0, %v1697_v3 }
  0xa6   : > { %v845_v17 = vpop.permute.xlu0 %844  ;;  %1540 = vmatprep.subr.bf16.mxu1 %v1697_v3 }
  0xa7   : > { %v847_v19 = vpop.permute.xlu1 %846 }
  0xa8   : > { %1469 = vmatmul.mubr.msk.bf16.vlgmr.msra.gmra.mxu0 %vm261_vm3, %v1467_v11  ;;  %v851_v29 = vsel %vm850_vm7, %v845_v17, %v847_v19 }
  0xa9   : > { %630 = vmatpush1.bf16.msra.mxu0 %v607_v16  ;;  %647 = vmatprep.mubr.bf16.mxu0 %v1699_v6  ;;  %v857_v32 = vsel %vm265_vm1, %v851_v29, 0 }
  0xaa   : > { %1476 = vmatprep.subr.msk.bf16.mxu0 %vm265_vm1, %v727_v18  ;;  %v849_v23 = vpop.permute.xlu0 %848 }
  0xab   : > { %v970_v25 = vpop.permute.xlu1 %969  ;;  %v852_v26 = vsel %vm850_vm7, %v847_v19, %v849_v23  ;;  %v863_v30 = vsel %vm265_vm1, %v849_v23, 0 }
  0xac   : > { %1537 = vmatmul.mubr.msk.bf16.vlgmr.msra.gmra.mxu1 %vm261_vm3, %v1471_v20 }
  0xad   : > { %1541 = vmatpush3.bf16.msra.mxu1 %v738_v22  ;;  %1542 = vmatprep.mubr.msk.bf16.mxu1 %vm1698_vm0, %v1697_v3 }
  0xae   : > { %1546 = vmatprep.subr.bf16.mxu1 %v1697_v3  ;;  %v972_v27 = vpop.permute.xlu0 %971 }
  0xaf   : > { %v974_v31 = vpop.permute.xlu1 %973  ;;  %v976_v37 = vsel %vm975_vm8, %v970_v25, %v972_v27 }
  0xb0   : > { %1473 = vmatmul.mubr.msk.bf16.vlgmr.msra.gmra.mxu0 %vm261_vm3, %v1471_v20  ;;  %v977_v34 = vsel %vm975_vm8, %v972_v27, %v974_v31  ;;  %v988_v38 = vsel %vm265_vm1, %v974_v31, 0  ;;  %v982_v40 = vsel %vm265_vm1, %v976_v37, 0 }
  0xb1   : > { %755 = vmatpush1.bf16.msra.mxu0 %v732_v24  ;;  %772 = vmatprep.mubr.bf16.mxu0 %v1699_v6 }
  0xb2   : > { %1480 = vmatprep.subr.msk.bf16.mxu0 %vm265_vm1, %v852_v26  ;;  %v1095_v33 = vpop.permute.xlu0 %1094 }
  0xb3   : > { %v1097_v35 = vpop.permute.xlu1 %1096 }
  0xb4   : > { %1543 = vmatmul.mubr.msk.bf16.vlgmr.msra.gmra.mxu1 %vm261_vm3, %v1475_v28  ;;  %v1101_v44 = vsel %vm1100_vm9, %v1095_v33, %v1097_v35 }
  0xb5   : > { %1547 = vmatpush3.bf16.msra.mxu1 %v863_v30  ;;  %1548 = vmatprep.mubr.msk.bf16.mxu1 %vm1698_vm0, %v1697_v3  ;;  %v1107_v48 = vsel %vm265_vm1, %v1101_v44, 0 }
  0xb6   : > { %1552 = vmatprep.subr.bf16.mxu1 %v1697_v3  ;;  %v1099_v39 = vpop.permute.xlu0 %1098 }
  0xb7   : > { %v1220_v41 = vpop.permute.xlu1 %1219  ;;  %v1102_v42 = vsel %vm1100_vm9, %v1097_v35, %v1099_v39  ;;  %v1113_v45 = vsel %vm265_vm1, %v1099_v39, 0 }
  0xb8   : > { %1477 = vmatmul.mubr.msk.bf16.vlgmr.msra.gmra.mxu0 %vm261_vm3, %v1475_v28 }
  0xb9   : > { %880 = vmatpush1.bf16.msra.mxu0 %v857_v32  ;;  %897 = vmatprep.mubr.bf16.mxu0 %v1699_v6 }
  0xba   : > { %1484 = vmatprep.subr.msk.bf16.mxu0 %vm265_vm1, %v977_v34  ;;  %v1222_v46 = vpop.permute.xlu0 %1221 }
  0xbb   : > { %v1224_v47 = vpop.permute.xlu1 %1223  ;;  %v1226_v51 = vsel %vm1225_vm10, %v1220_v41, %v1222_v46 }
  0xbc   : > { %1549 = vmatmul.mubr.msk.bf16.vlgmr.msra.gmra.mxu1 %vm261_vm3, %v1479_v36  ;;  %v1227_v49 = vsel %vm1225_vm10, %v1222_v46, %v1224_v47  ;;  %v1238_v52 = vsel %vm265_vm1, %v1224_v47, 0  ;;  %v1232_v53 = vsel %vm265_vm1, %v1226_v51, 0 }
  0xbd   : > { %1553 = vmatpush3.bf16.msra.mxu1 %v988_v38  ;;  %1554 = vmatprep.mubr.msk.bf16.mxu1 %vm1698_vm0, %v1697_v3 }
  0xbe   : > { %1558 = vmatprep.subr.bf16.mxu1 %v1697_v3 }
  0xc0   : > { %1481 = vmatmul.mubr.msk.bf16.vlgmr.msra.gmra.mxu0 %vm261_vm3, %v1479_v36 }
  0xc1   : > { %1005 = vmatpush1.bf16.msra.mxu0 %v982_v40  ;;  %1022 = vmatprep.mubr.bf16.mxu0 %v1699_v6 }
  0xc2   : > { %1488 = vmatprep.subr.msk.bf16.mxu0 %vm265_vm1, %v1102_v42 }
  0xc4   : > { %1555 = vmatmul.mubr.msk.bf16.vlgmr.msra.gmra.mxu1 %vm261_vm3, %v1483_v43 }
  0xc5   : > { %1559 = vmatpush3.bf16.msra.mxu1 %v1113_v45  ;;  %1560 = vmatprep.mubr.msk.bf16.mxu1 %vm1698_vm0, %v1697_v3 }
  0xc6   : > { %1564 = vmatprep.subr.bf16.mxu1 %v1697_v3 }
  0xc8   : > { %1485 = vmatmul.mubr.msk.bf16.vlgmr.msra.gmra.mxu0 %vm261_vm3, %v1483_v43 }
  0xc9   : > { %1130 = vmatpush1.bf16.msra.mxu0 %v1107_v48  ;;  %1147 = vmatprep.mubr.bf16.mxu0 %v1699_v6 }
  0xca   : > { %1492 = vmatprep.subr.msk.bf16.mxu0 %vm265_vm1, %v1227_v49 }
  0xcc   : > { %1561 = vmatmul.mubr.msk.bf16.vlgmr.msra.gmra.mxu1 %vm261_vm3, %v1487_v50 }
  0xcd   : > { %1565 = vmatpush3.bf16.msra.mxu1 %v1238_v52  ;;  %1566 = vmatprep.mubr.msk.bf16.mxu1 %vm1698_vm0, %v1697_v3 }
  0xd0   : > { %1489 = vmatmul.mubr.msk.bf16.vlgmr.msra.gmra.mxu0 %vm261_vm3, %v1487_v50 }
  0xd1   : > { %1255 = vmatpush1.bf16.msra.mxu0 %v1232_v53  ;;  %1272 = vmatprep.mubr.bf16.mxu0 %v1699_v6 }
  0xd4   : > { %1567 = vmatmul.mubr.msk.bf16.vlgmr.msra.gmra.mxu1 %vm261_vm3, %v1491_v54 }
  0xd8   : > { %1493 = vmatmul.mubr.msk.bf16.vlgmr.msra.gmra.mxu0 %vm261_vm3, %v1491_v54 }
 0x154   : > { %v350_v55 = vpop.f32.mrf.mxu1 }
 0x156   : > { %v1520_v56 = vpop.f32.mrf.mxu1 }
 0x158   : > { %v309_v57 = vpop.f32.mrf.mxu0  ;;  %v353_v58 = vpop.f32.mrf.mxu1 }
 0x15a   : > { %v311_v59 = vpop.f32.mrf.mxu0  ;;  %v1521_v60 = vpop.f32.mrf.mxu1 }
 0x15c   : > { %v313_v3 = vpop.f32.mrf.mxu0  ;;  %v443_v61 = vpop.f32.mrf.mxu1 }
 0x15d   : > { %v444_v41 = vadd.f32 %v443_v61, %v350_v55 }
 0x15e   : > { %v314_v62 = vpop.f32.mrf.mxu0  ;;  %v1526_v63 = vpop.f32.mrf.mxu1 }
 0x160   : > { %v402_v0 = vpop.f32.mrf.mxu0  ;;  %v446_v6 = vpop.f32.mrf.mxu1 }
 0x161   : > { %v403_v46 = vadd.f32 %v402_v0, %v309_v57 }
 0x162   : > { %v404_v1 = vpop.f32.mrf.mxu0  ;;  %v1527_v2 = vpop.f32.mrf.mxu1 }
 0x163   : > { %v405_v50 = vadd.f32 %v404_v1, %v311_v59 }
 0x164   : > { %v406_v4 = vpop.f32.mrf.mxu0  ;;  %v565_v5 = vpop.f32.mrf.mxu1 }
 0x165   : > { %v573_v44 = vadd.f32 %v565_v5, %v444_v41 }
 0x166   : > { %v407_v7 = vpop.f32.mrf.mxu0  ;;  %v1532_v8 = vpop.f32.mrf.mxu1 }
 0x168   : > { %v524_v9 = vpop.f32.mrf.mxu0  ;;  %v568_v10 = vpop.f32.mrf.mxu1 }
 0x169   : > { %v571_v51 = vadd.f32 %v524_v9, %v403_v46  ;;  %v1328_v9 = vpop.permute.xlu0 %1327 }
 0x16a   : > { %v526_v11 = vpop.f32.mrf.mxu0  ;;  %v1533_v12 = vpop.f32.mrf.mxu1 }
 0x16b   : > { %v572_v56 = vadd.f32 %v526_v11, %v405_v50 }
 0x16c   : > { %v528_v13 = vpop.f32.mrf.mxu0  ;;  %v690_v14 = vpop.f32.mrf.mxu1 }
 0x16d   : > { %v698_v48 = vadd.f32 %v690_v14, %v573_v44 }
 0x16e   : > { %v529_v15 = vpop.f32.mrf.mxu0  ;;  %v1538_v16 = vpop.f32.mrf.mxu1 }
 0x16f   : > { %v1337_v15 = vpop.permute.xlu1 %1336 }
 0x170   : > { %v649_v17 = vpop.f32.mrf.mxu0  ;;  %v693_v18 = vpop.f32.mrf.mxu1 }
 0x171   : > { %v696_v58 = vadd.f32 %v649_v17, %v571_v51 }
 0x172   : > { %v651_v19 = vpop.f32.mrf.mxu0  ;;  %v1539_v20 = vpop.f32.mrf.mxu1 }
 0x173   : > { %v697_v55 = vadd.f32 %v651_v19, %v572_v56 }
 0x174   : > { %v653_v21 = vpop.f32.mrf.mxu0  ;;  %v815_v22 = vpop.f32.mrf.mxu1 }
 0x175   : > { %v823_v53 = vadd.f32 %v815_v22, %v698_v48 }
 0x176   : > { %v654_v23 = vpop.f32.mrf.mxu0  ;;  %v1544_v24 = vpop.f32.mrf.mxu1 }
 0x178   : > { %v774_v25 = vpop.f32.mrf.mxu0  ;;  %v818_v26 = vpop.f32.mrf.mxu1 }
 0x179   : > { %v821_v61 = vadd.f32 %v774_v25, %v696_v58 }
 0x17a   : > { %v776_v27 = vpop.f32.mrf.mxu0  ;;  %v1545_v28 = vpop.f32.mrf.mxu1 }
 0x17b   : > { %v822_v57 = vadd.f32 %v776_v27, %v697_v55 }
 0x17c   : > { %v778_v29 = vpop.f32.mrf.mxu0  ;;  %v940_v30 = vpop.f32.mrf.mxu1 }
 0x17d   : > { %v948_v3 = vadd.f32 %v940_v30, %v823_v53 }
 0x17e   : > { %v779_v31 = vpop.f32.mrf.mxu0  ;;  %v1550_v32 = vpop.f32.mrf.mxu1 }
 0x180   : > { %v899_v33 = vpop.f32.mrf.mxu0  ;;  %v943_v34 = vpop.f32.mrf.mxu1 }
 0x181   : > { %v946_v0 = vadd.f32 %v899_v33, %v821_v61 }
 0x182   : > { %v901_v35 = vpop.f32.mrf.mxu0  ;;  %v1551_v36 = vpop.f32.mrf.mxu1 }
 0x183   : > { %v947_v5 = vadd.f32 %v901_v35, %v822_v57 }
 0x184   : > { %v903_v37 = vpop.f32.mrf.mxu0  ;;  %v1065_v38 = vpop.f32.mrf.mxu1 }
 0x185   : > { %v1073_v6 = vadd.f32 %v1065_v38, %v948_v3 }
 0x186   : > { %v904_v39 = vpop.f32.mrf.mxu0  ;;  %v1556_v40 = vpop.f32.mrf.mxu1 }
 0x188   : > { %v1024_v42 = vpop.f32.mrf.mxu0  ;;  %v1068_v43 = vpop.f32.mrf.mxu1 }
 0x189   : > { %v1071_v7 = vadd.f32 %v1024_v42, %v946_v0 }
 0x18a   : > { %v1026_v45 = vpop.f32.mrf.mxu0  ;;  %v1557_v47 = vpop.f32.mrf.mxu1 }
 0x18b   : > { %v1072_v12 = vadd.f32 %v1026_v45, %v947_v5 }
 0x18c   : > { %v1028_v49 = vpop.f32.mrf.mxu0  ;;  %v1190_v52 = vpop.f32.mrf.mxu1 }
 0x18d   : > { %v1198_v59 = vadd.f32 %v1190_v52, %v1073_v6 }
 0x18e   : > { %v1029_v54 = vpop.f32.mrf.mxu0  ;;  %v1562_v60 = vpop.f32.mrf.mxu1 }
 0x190   : > { %v1149_v62 = vpop.f32.mrf.mxu0  ;;  %v1193_v63 = vpop.f32.mrf.mxu1 }
 0x191   : > { %v1196_v13 = vadd.f32 %v1149_v62, %v1071_v7 }
 0x192   : > { %v1151_v2 = vpop.f32.mrf.mxu0  ;;  %v1563_v4 = vpop.f32.mrf.mxu1 }
 0x193   : > { %v1197_v18 = vadd.f32 %v1151_v2, %v1072_v12 }
 0x194   : > { %v1153_v1 = vpop.f32.mrf.mxu0  ;;  %v1315_v8 = vpop.f32.mrf.mxu1 }
 0x195   : > { %v1323_v10 = vadd.f32 %v1315_v8, %v1198_v59 }
 0x196   : > { %v1154_v11 = vpop.f32.mrf.mxu0  ;;  %v1568_v14 = vpop.f32.mrf.mxu1 }
 0x197   : > { %v1332_v16 = vmul.f32 %v1328_v9, %v1323_v10 }
 0x198   : > { %v1274_v17 = vpop.f32.mrf.mxu0  ;;  %v1318_v20 = vpop.f32.mrf.mxu1 }
 0x199   : > { %v1321_v19 = vadd.f32 %v1274_v17, %v1196_v13  ;;  %v1341_v21 = vadd.f32 %v1337_v15, %v1332_v16 }
 0x19a   : > { %v1276_v22 = vpop.f32.mrf.mxu0  ;;  %v1569_v25 = vpop.f32.mrf.mxu1 }
 0x19b   : > { %v1330_v23 = vmul.f32 %v1328_v9, %v1321_v19  ;;  %v1322_v24 = vadd.f32 %v1276_v22, %v1197_v18  ;;  %vm1344_vm11 = vcmp.gt.f32.partialorder %v1341_v21, 0.0  ;;  %v1347_v26 = vmul.f32 0.2, %v1341_v21 }
 0x19c   : > { %v1278_v27 = vpop.f32.mrf.mxu0 }
 0x19d   : > { %v1339_v28 = vadd.f32 %v1337_v15, %v1330_v23  ;;  %v1331_v29 = vmul.f32 %v1328_v9, %v1322_v24  ;;  %v1350_v30 = vsel %vm1344_vm11, %v1341_v21, %v1347_v26 }
 0x19e   : > { %v1279_v31 = vpop.f32.mrf.mxu0  ;;  %1354 = vst.msk [vmem:[%s216_s8 + $0x10] sm:$0xff] %vm1353_vm12, %v1350_v30 }
 0x19f   : > { %vm1342_vm13 = vcmp.gt.f32.partialorder %v1339_v28, 0.0  ;;  %v1345_v32 = vmul.f32 0.2, %v1339_v28  ;;  %v1340_v33 = vadd.f32 %v1337_v15, %v1331_v29 }
 0x1a1   : > { %v1348_v34 = vsel %vm1342_vm13, %v1339_v28, %v1345_v32  ;;  %vm1343_vm14 = vcmp.gt.f32.partialorder %v1340_v33, 0.0  ;;  %v1346_v35 = vmul.f32 0.2, %v1340_v33 }
 0x1a2   : > { %1351 = vst [vmem:[%s216_s8] sm:$0xff] %v1348_v34 }
 0x1a3   : > { %v1349_v36 = vsel %vm1343_vm14, %v1340_v33, %v1346_v35 }
 0x1a4   : > { %1352 = vst [vmem:[%s216_s8 + $0x8] sm:$0xff] %v1349_v36 }
 0x1a5   : > { %1647 = shalt.err (!%p1644_p3)
}
 0x1a6   : > { %s1648_s23 = scalar_lea.hbm %s1958_s12, 384  ;;  %s1652_s30 = scalar_lea.hbm %s1999_s4, 768 }
 0x1a7   : > { %p1649_p4 = scmp.ne.s32.totalorder %s1958_s12, %s1648_s23  ;;  %p1653_p9 = scmp.lt.s32.totalorder %s1958_s12, %s1999_s4 }
 0x1a8   : > { %p1654_p10 = scmp.lt.s32.totalorder %s1652_s30, %s1648_s23 }
 0x1a9   : > { %p1650_p7 = pnand %p1649_p4, %p1772_p5 }
 0x1aa   : > { %p1655_p11 = por %p1654_p10, %p1653_p9 }
 0x1ab   : > { %p1651_p8 = pneg %p1650_p7 }
 0x1ad   : > { %p1656_p12 = pnand %p1655_p11, %p1651_p8 }
 0x1af   : > { %1659 = shalt.err (!%p1656_p12)
}
 0x1b0   : > { %1573 = dma.vmem_to_hbm [thread:$0]  (%p1772_p5), %s1371_s9, 384, %s1958_s12, %s1356_s19  }
 0x1b1 PF: > { %p1579_p13 = scmp.ge.s32.totalorder %s1694_s18, 2  ;;  %s1382_s6 = sand.u32 1, %s1682_s15  }
 0x1b2   : > { %s1383_s7 = scalar_lea.sflag [#allocation3], %s1382_s6 }
 0x1b3   : > { %p1576_p0 = pnand %p1579_p13, %p1776_p6 }
 0x1b5   : > { %p1577_p1 = pneg %p1576_p0 }
 0x1b7   : > { %1677 = dma.done.wait (%p1577_p1), %s1383_s7, 384  }
 0x1b8   : > { %1679 = vsyncadd (%p1577_p1), %s1383_s7, 4294966912  ;;  %p14_p2 = scmp.ge.s32.totalorder %s1759_s21, 4   ;;  %s2002_s15 = smov %s1686_s16 }
 0x1b9   : > { %s2003_s16 = smov %s1690_s17  ;;  %s2004_s17 = smov %s1770_s24 }
 0x1ba   : > { %s2005_s18 = smov %s1759_s21  ;;  %16 = sbr.rel (!%p14_p2) target bundleno = 3 (0x3), region = 85 }
 0x1bf   :  { %1388 = vsyncpa [#allocation3], 1 }
 0x1c0   :  { %1390 = vsyncpa [#allocation3 + $0x1], 1 }

</bundles_post_ra>
